<compile_context>
chip_gen: v6e
topology: v6e:2x2x1
jax: 0.10.0
libtpu: 0.0.40
codegen_flags: <defaults>
</compile_context>

<pallas_src>
import functools

import numpy as np
import jax
import jax.numpy as jnp
from jax.experimental import pallas as pl
from jax.experimental.pallas import tpu as pltpu


def _gather_rows_kernel(row_map_ref, src_ref, out_ref, *, rows_blk):
    """out[i, :] = src[row_map[base + i], :] for the rows of this grid step.

    row_map_ref : (R_pad,)        int32, SMEM (scalar prefetch)
    src_ref     : (n_src, B*K)    VMEM   -- [known values | new values | timesteps]
    out_ref     : (rows_blk, B*K) VMEM   -- this step's block of output rows
    """
    base = pl.program_id(0) * rows_blk
    # rows_blk is small & static: unroll so every destination offset is a
    # static sublane slice; only the source row index (read from SMEM) is
    # dynamic.  Each copy is a full lane-width row.
    for i in range(rows_blk):
        s = row_map_ref[base + i]
        out_ref[i:i + 1, :] = src_ref[pl.ds(s, 1), :]


class PreparationWithTimeAugmentation:
    """JAX/Pallas equivalent of the PyTorch module (forward pass only)."""

    def __init__(self, order, timesteps_cut, dim, extended_order):
        self.order = np.asarray(order, dtype=np.int32).reshape(-1)                    # (cut,)
        self.extended_order = np.asarray(extended_order, dtype=np.int32).reshape(-1)  # (cut*d,)
        self.cut = int(timesteps_cut)
        self.d = int(dim)

    def __call__(self, x, y):
        cut, d = self.cut, self.d
        y3 = y[:, :, None] if y.ndim == 2 else y
        B = x.shape[0]
        K = y3.shape[2]
        n_known = x.shape[1] - cut
        n_new = y3.shape[1]
        M = n_known + n_new
        assert self.extended_order.shape[0] == cut * d
        BK = B * K

        out_dtype = jnp.result_type(x.dtype, y3.dtype)
        x = x.astype(out_dtype)
        y3 = y3.astype(out_dtype)

        # ---- lane-dense source slab: gather axis on sublanes, B*K on lanes ----
        #   rows [0, n_known) : known values (K-broadcast, same bytes torch.cat makes)
        #   rows [n_known, M) : newly sampled values y
        #   rows [M, M + cut) : timesteps (K-broadcast)
        # column layout is c = b*K + k
        src_known = jnp.repeat(x[:, cut:].T, K, axis=1)                # (n_known, BK)
        src_new = jnp.transpose(y3, (1, 0, 2)).reshape(n_new, BK)      # (n_new,  BK)
        src_time = jnp.repeat(x[:, :cut].T, K, axis=1)                 # (cut,    BK)
        src = jnp.concatenate([src_known, src_new, src_time], axis=0)  # (n_src,  BK)
        n_src = M + cut

        # ---- static row map: fuses both gathers and the feature-axis concat ----
        # output row R = t*(d+1) + j :
        #   j <  d -> values[:, extended_order[t*d + j]]
        #   j == d -> timesteps[:, order[t]]
        R_total = cut * (d + 1)
        row_map = np.empty((cut, d + 1), dtype=np.int32)
        row_map[:, :d] = self.extended_order.reshape(cut, d)
        row_map[:, d] = M + self.order
        row_map = row_map.reshape(-1)

        # Pad output rows to a multiple of 16 so the grid is exactly two
        # row-blocks, each a multiple of 8 sublanes: keeps both v7x TCs busy,
        # keeps per-step work large, satisfies the (8,128)/full-dim block rule.
        R_pad = ((R_total + 15) // 16) * 16
        rows_blk = R_pad // 2
        row_map_pad = np.zeros((R_pad,), dtype=np.int32)
        row_map_pad[:R_total] = row_map

        kernel = functools.partial(_gather_rows_kernel, rows_blk=rows_blk)
        out = pl.pallas_call(
            kernel,
            out_shape=jax.ShapeDtypeStruct((R_pad, BK), out_dtype),
            grid_spec=pltpu.PrefetchScalarGridSpec(
                num_scalar_prefetch=1,
                grid=(2,),
                in_specs=[
                    # whole source slab; constant block index -> fetched once,
                    # stays resident across both grid steps.
                    pl.BlockSpec((n_src, BK), lambda r, rm: (0, 0)),
                ],
                out_specs=pl.BlockSpec((rows_blk, BK), lambda r, rm: (r, 0)),
            ),
            compiler_params=pltpu.CompilerParams(
                dimension_semantics=("parallel",)),
        )(jnp.asarray(row_map_pad), src)

        path = out[:R_total].reshape(cut, d + 1, B, K)
        path = jnp.transpose(path, (2, 0, 1, 3))          # (B, cut, d+1, K)
        if K == 1:                                        # torch .squeeze(-1)
            path = path[..., 0]
        return path


def ref_forward(x, y, order, extended_order, cut, d):
    """Pure-JAX reference mirroring the PyTorch forward exactly."""
    if y.ndim == 2:
        y = y[:, :, None]
    K = y.shape[2]
    B = x.shape[0]
    timesteps = x[:, :cut]
    values = x[:, cut:, None]
    values = jnp.concatenate(
        [jnp.broadcast_to(values, (B, values.shape[1], K)), y], axis=1)
    values = values[:, jnp.asarray(extended_order, dtype=jnp.int32)]
    values = values.reshape(B, cut, d, K)
    timesteps = timesteps[:, jnp.asarray(order, dtype=jnp.int32)]
    path = jnp.concatenate(
        [values, jnp.broadcast_to(timesteps[:, :, None, None], (B, cut, 1, K))],
        axis=2)
    if K == 1:
        path = path[..., 0]   # torch .squeeze(-1) only squeezes when K == 1
    return path


if __name__ == "__main__":
    B, cut, d, K = 2, 8, 4, 2
    n_known, n_new = 16, 16         # M = n_known + n_new = 32 = cut * d

    key = jax.random.PRNGKey(0)
    k1, k2, k3, k4, k5 = jax.random.split(key, 5)
    x = jax.random.normal(k1, (B, cut + n_known), dtype=jnp.float32)
    y = jax.random.normal(k2, (B, n_new, K), dtype=jnp.float32)

    # Deterministic index parameters (as in the module's __init__).
    order = np.asarray(jax.random.permutation(k3, cut), dtype=np.int32)
    extended_order = np.asarray(jax.random.permutation(k4, cut * d), dtype=np.int32)

    mod = PreparationWithTimeAugmentation(order, cut, d, extended_order)

    # 3-D y path (K > 1)
    out = jax.block_until_ready(mod(x, y))
    ref = ref_forward(x, y, order, extended_order, cut, d)
    np.testing.assert_allclose(np.asarray(out), np.asarray(ref), rtol=1e-6, atol=1e-6)

    # 2-D y path (K == 1, output squeezed)
    y2 = jax.random.normal(k5, (B, n_new), dtype=jnp.float32)
    out2 = jax.block_until_ready(mod(x, y2))
    ref2 = ref_forward(x, y2, order, extended_order, cut, d)
    np.testing.assert_allclose(np.asarray(out2), np.asarray(ref2), rtol=1e-6, atol=1e-6)

    print("KERNEL_OK")
</pallas_src>

<mosaic_0001>
module attributes {stable_mosaic.version = 11 : i64} {
  func.func @_gather_rows_kernel(%arg0: i32, %arg1: memref<48xi32, #tpu.memory_space<smem>>, %arg2: memref<40x4xf32, #tpu.memory_space<vmem>>, %arg3: memref<24x4xf32, #tpu.memory_space<vmem>>) attributes {dimension_semantics = [#tpu.dimension_semantics<parallel>], iteration_bounds = array<i64: 2>, scalar_prefetch = 1 : i64, scratch_operands = 0 : i64, tpu.core_type = #tpu.core_type<tc>, window_params = [{pipeline_mode = #tpu.pipeline_mode<synchronous>, transform_indices = @transform_0, window_bounds = array<i64: 40, 4>}, {transform_indices = @transform_1, window_bounds = array<i64: 24, 4>}]} {
    %c24_i32 = arith.constant 24 : i32
    %0 = arith.muli %arg0, %c24_i32 : i32
    %c0_i32 = arith.constant 0 : i32
    %1 = arith.addi %0, %c0_i32 : i32
    %2 = arith.index_cast %1 : i32 to index
    %3 = memref.load %arg1[%2] : memref<48xi32, #tpu.memory_space<smem>>
    %4 = arith.index_cast %3 : i32 to index
    %c0 = arith.constant 0 : index
    %5 = vector.load %arg2[%4, %c0] : memref<40x4xf32, #tpu.memory_space<vmem>>, vector<1x4xf32>
    %c0_0 = arith.constant 0 : index
    %c0_1 = arith.constant 0 : index
    %6 = vector.load %arg3[%c0_0, %c0_1] : memref<24x4xf32, #tpu.memory_space<vmem>>, vector<1x4xf32>
    tpu.vector_store %arg3[%c0_0, %c0_1], %5 {strides = array<i32>} : memref<24x4xf32, #tpu.memory_space<vmem>>, vector<1x4xf32>,
    %c1_i32 = arith.constant 1 : i32
    %7 = arith.addi %0, %c1_i32 : i32
    %8 = arith.index_cast %7 : i32 to index
    %9 = memref.load %arg1[%8] : memref<48xi32, #tpu.memory_space<smem>>
    %10 = arith.index_cast %9 : i32 to index
    %c0_2 = arith.constant 0 : index
    %11 = vector.load %arg2[%10, %c0_2] : memref<40x4xf32, #tpu.memory_space<vmem>>, vector<1x4xf32>
    %c1 = arith.constant 1 : index
    %c0_3 = arith.constant 0 : index
    %12 = vector.load %arg3[%c1, %c0_3] : memref<24x4xf32, #tpu.memory_space<vmem>>, vector<1x4xf32>
    tpu.vector_store %arg3[%c1, %c0_3], %11 {strides = array<i32>} : memref<24x4xf32, #tpu.memory_space<vmem>>, vector<1x4xf32>,
    %c2_i32 = arith.constant 2 : i32
    %13 = arith.addi %0, %c2_i32 : i32
    %14 = arith.index_cast %13 : i32 to index
    %15 = memref.load %arg1[%14] : memref<48xi32, #tpu.memory_space<smem>>
    %16 = arith.index_cast %15 : i32 to index
    %c0_4 = arith.constant 0 : index
    %17 = vector.load %arg2[%16, %c0_4] : memref<40x4xf32, #tpu.memory_space<vmem>>, vector<1x4xf32>
    %c2 = arith.constant 2 : index
    %c0_5 = arith.constant 0 : index
    %18 = vector.load %arg3[%c2, %c0_5] : memref<24x4xf32, #tpu.memory_space<vmem>>, vector<1x4xf32>
    tpu.vector_store %arg3[%c2, %c0_5], %17 {strides = array<i32>} : memref<24x4xf32, #tpu.memory_space<vmem>>, vector<1x4xf32>,
    %c3_i32 = arith.constant 3 : i32
    %19 = arith.addi %0, %c3_i32 : i32
    %20 = arith.index_cast %19 : i32 to index
    %21 = memref.load %arg1[%20] : memref<48xi32, #tpu.memory_space<smem>>
    %22 = arith.index_cast %21 : i32 to index
    %c0_6 = arith.constant 0 : index
    %23 = vector.load %arg2[%22, %c0_6] : memref<40x4xf32, #tpu.memory_space<vmem>>, vector<1x4xf32>
    %c3 = arith.constant 3 : index
    %c0_7 = arith.constant 0 : index
    %24 = vector.load %arg3[%c3, %c0_7] : memref<24x4xf32, #tpu.memory_space<vmem>>, vector<1x4xf32>
    tpu.vector_store %arg3[%c3, %c0_7], %23 {strides = array<i32>} : memref<24x4xf32, #tpu.memory_space<vmem>>, vector<1x4xf32>,
    %c4_i32 = arith.constant 4 : i32
    %25 = arith.addi %0, %c4_i32 : i32
    %26 = arith.index_cast %25 : i32 to index
    %27 = memref.load %arg1[%26] : memref<48xi32, #tpu.memory_space<smem>>
    %28 = arith.index_cast %27 : i32 to index
    %c0_8 = arith.constant 0 : index
    %29 = vector.load %arg2[%28, %c0_8] : memref<40x4xf32, #tpu.memory_space<vmem>>, vector<1x4xf32>
    %c4 = arith.constant 4 : index
    %c0_9 = arith.constant 0 : index
    %30 = vector.load %arg3[%c4, %c0_9] : memref<24x4xf32, #tpu.memory_space<vmem>>, vector<1x4xf32>
    tpu.vector_store %arg3[%c4, %c0_9], %29 {strides = array<i32>} : memref<24x4xf32, #tpu.memory_space<vmem>>, vector<1x4xf32>,
    %c5_i32 = arith.constant 5 : i32
    %31 = arith.addi %0, %c5_i32 : i32
    %32 = arith.index_cast %31 : i32 to index
    %33 = memref.load %arg1[%32] : memref<48xi32, #tpu.memory_space<smem>>
    %34 = arith.index_cast %33 : i32 to index
    %c0_10 = arith.constant 0 : index
    %35 = vector.load %arg2[%34, %c0_10] : memref<40x4xf32, #tpu.memory_space<vmem>>, vector<1x4xf32>
    %c5 = arith.constant 5 : index
    %c0_11 = arith.constant 0 : index
    %36 = vector.load %arg3[%c5, %c0_11] : memref<24x4xf32, #tpu.memory_space<vmem>>, vector<1x4xf32>
    tpu.vector_store %arg3[%c5, %c0_11], %35 {strides = array<i32>} : memref<24x4xf32, #tpu.memory_space<vmem>>, vector<1x4xf32>,
    %c6_i32 = arith.constant 6 : i32
    %37 = arith.addi %0, %c6_i32 : i32
    %38 = arith.index_cast %37 : i32 to index
    %39 = memref.load %arg1[%38] : memref<48xi32, #tpu.memory_space<smem>>
    %40 = arith.index_cast %39 : i32 to index
    %c0_12 = arith.constant 0 : index
    %41 = vector.load %arg2[%40, %c0_12] : memref<40x4xf32, #tpu.memory_space<vmem>>, vector<1x4xf32>
    %c6 = arith.constant 6 : index
    %c0_13 = arith.constant 0 : index
    %42 = vector.load %arg3[%c6, %c0_13] : memref<24x4xf32, #tpu.memory_space<vmem>>, vector<1x4xf32>
    tpu.vector_store %arg3[%c6, %c0_13], %41 {strides = array<i32>} : memref<24x4xf32, #tpu.memory_space<vmem>>, vector<1x4xf32>,
    %c7_i32 = arith.constant 7 : i32
    %43 = arith.addi %0, %c7_i32 : i32
    %44 = arith.index_cast %43 : i32 to index
    %45 = memref.load %arg1[%44] : memref<48xi32, #tpu.memory_space<smem>>
    %46 = arith.index_cast %45 : i32 to index
    %c0_14 = arith.constant 0 : index
    %47 = vector.load %arg2[%46, %c0_14] : memref<40x4xf32, #tpu.memory_space<vmem>>, vector<1x4xf32>
    %c7 = arith.constant 7 : index
    %c0_15 = arith.constant 0 : index
    %48 = vector.load %arg3[%c7, %c0_15] : memref<24x4xf32, #tpu.memory_space<vmem>>, vector<1x4xf32>
    tpu.vector_store %arg3[%c7, %c0_15], %47 {strides = array<i32>} : memref<24x4xf32, #tpu.memory_space<vmem>>, vector<1x4xf32>,
    %c8_i32 = arith.constant 8 : i32
    %49 = arith.addi %0, %c8_i32 : i32
    %50 = arith.index_cast %49 : i32 to index
    %51 = memref.load %arg1[%50] : memref<48xi32, #tpu.memory_space<smem>>
    %52 = arith.index_cast %51 : i32 to index
    %c0_16 = arith.constant 0 : index
    %53 = vector.load %arg2[%52, %c0_16] : memref<40x4xf32, #tpu.memory_space<vmem>>, vector<1x4xf32>
    %c8 = arith.constant 8 : index
    %c0_17 = arith.constant 0 : index
    %54 = vector.load %arg3[%c8, %c0_17] : memref<24x4xf32, #tpu.memory_space<vmem>>, vector<1x4xf32>
    tpu.vector_store %arg3[%c8, %c0_17], %53 {strides = array<i32>} : memref<24x4xf32, #tpu.memory_space<vmem>>, vector<1x4xf32>,
    %c9_i32 = arith.constant 9 : i32
    %55 = arith.addi %0, %c9_i32 : i32
    %56 = arith.index_cast %55 : i32 to index
    %57 = memref.load %arg1[%56] : memref<48xi32, #tpu.memory_space<smem>>
    %58 = arith.index_cast %57 : i32 to index
    %c0_18 = arith.constant 0 : index
    %59 = vector.load %arg2[%58, %c0_18] : memref<40x4xf32, #tpu.memory_space<vmem>>, vector<1x4xf32>
    %c9 = arith.constant 9 : index
    %c0_19 = arith.constant 0 : index
    %60 = vector.load %arg3[%c9, %c0_19] : memref<24x4xf32, #tpu.memory_space<vmem>>, vector<1x4xf32>
    tpu.vector_store %arg3[%c9, %c0_19], %59 {strides = array<i32>} : memref<24x4xf32, #tpu.memory_space<vmem>>, vector<1x4xf32>,
    %c10_i32 = arith.constant 10 : i32
    %61 = arith.addi %0, %c10_i32 : i32
    %62 = arith.index_cast %61 : i32 to index
    %63 = memref.load %arg1[%62] : memref<48xi32, #tpu.memory_space<smem>>
    %64 = arith.index_cast %63 : i32 to index
    %c0_20 = arith.constant 0 : index
    %65 = vector.load %arg2[%64, %c0_20] : memref<40x4xf32, #tpu.memory_space<vmem>>, vector<1x4xf32>
    %c10 = arith.constant 10 : index
    %c0_21 = arith.constant 0 : index
    %66 = vector.load %arg3[%c10, %c0_21] : memref<24x4xf32, #tpu.memory_space<vmem>>, vector<1x4xf32>
    tpu.vector_store %arg3[%c10, %c0_21], %65 {strides = array<i32>} : memref<24x4xf32, #tpu.memory_space<vmem>>, vector<1x4xf32>,
    %c11_i32 = arith.constant 11 : i32
    %67 = arith.addi %0, %c11_i32 : i32
    %68 = arith.index_cast %67 : i32 to index
    %69 = memref.load %arg1[%68] : memref<48xi32, #tpu.memory_space<smem>>
    %70 = arith.index_cast %69 : i32 to index
    %c0_22 = arith.constant 0 : index
    %71 = vector.load %arg2[%70, %c0_22] : memref<40x4xf32, #tpu.memory_space<vmem>>, vector<1x4xf32>
    %c11 = arith.constant 11 : index
    %c0_23 = arith.constant 0 : index
    %72 = vector.load %arg3[%c11, %c0_23] : memref<24x4xf32, #tpu.memory_space<vmem>>, vector<1x4xf32>
    tpu.vector_store %arg3[%c11, %c0_23], %71 {strides = array<i32>} : memref<24x4xf32, #tpu.memory_space<vmem>>, vector<1x4xf32>,
    %c12_i32 = arith.constant 12 : i32
    %73 = arith.addi %0, %c12_i32 : i32
    %74 = arith.index_cast %73 : i32 to index
    %75 = memref.load %arg1[%74] : memref<48xi32, #tpu.memory_space<smem>>
    %76 = arith.index_cast %75 : i32 to index
    %c0_24 = arith.constant 0 : index
    %77 = vector.load %arg2[%76, %c0_24] : memref<40x4xf32, #tpu.memory_space<vmem>>, vector<1x4xf32>
    %c12 = arith.constant 12 : index
    %c0_25 = arith.constant 0 : index
    %78 = vector.load %arg3[%c12, %c0_25] : memref<24x4xf32, #tpu.memory_space<vmem>>, vector<1x4xf32>
    tpu.vector_store %arg3[%c12, %c0_25], %77 {strides = array<i32>} : memref<24x4xf32, #tpu.memory_space<vmem>>, vector<1x4xf32>,
    %c13_i32 = arith.constant 13 : i32
    %79 = arith.addi %0, %c13_i32 : i32
    %80 = arith.index_cast %79 : i32 to index
    %81 = memref.load %arg1[%80] : memref<48xi32, #tpu.memory_space<smem>>
    %82 = arith.index_cast %81 : i32 to index
    %c0_26 = arith.constant 0 : index
    %83 = vector.load %arg2[%82, %c0_26] : memref<40x4xf32, #tpu.memory_space<vmem>>, vector<1x4xf32>
    %c13 = arith.constant 13 : index
    %c0_27 = arith.constant 0 : index
    %84 = vector.load %arg3[%c13, %c0_27] : memref<24x4xf32, #tpu.memory_space<vmem>>, vector<1x4xf32>
    tpu.vector_store %arg3[%c13, %c0_27], %83 {strides = array<i32>} : memref<24x4xf32, #tpu.memory_space<vmem>>, vector<1x4xf32>,
    %c14_i32 = arith.constant 14 : i32
    %85 = arith.addi %0, %c14_i32 : i32
    %86 = arith.index_cast %85 : i32 to index
    %87 = memref.load %arg1[%86] : memref<48xi32, #tpu.memory_space<smem>>
    %88 = arith.index_cast %87 : i32 to index
    %c0_28 = arith.constant 0 : index
    %89 = vector.load %arg2[%88, %c0_28] : memref<40x4xf32, #tpu.memory_space<vmem>>, vector<1x4xf32>
    %c14 = arith.constant 14 : index
    %c0_29 = arith.constant 0 : index
    %90 = vector.load %arg3[%c14, %c0_29] : memref<24x4xf32, #tpu.memory_space<vmem>>, vector<1x4xf32>
    tpu.vector_store %arg3[%c14, %c0_29], %89 {strides = array<i32>} : memref<24x4xf32, #tpu.memory_space<vmem>>, vector<1x4xf32>,
    %c15_i32 = arith.constant 15 : i32
    %91 = arith.addi %0, %c15_i32 : i32
    %92 = arith.index_cast %91 : i32 to index
    %93 = memref.load %arg1[%92] : memref<48xi32, #tpu.memory_space<smem>>
    %94 = arith.index_cast %93 : i32 to index
    %c0_30 = arith.constant 0 : index
    %95 = vector.load %arg2[%94, %c0_30] : memref<40x4xf32, #tpu.memory_space<vmem>>, vector<1x4xf32>
    %c15 = arith.constant 15 : index
    %c0_31 = arith.constant 0 : index
    %96 = vector.load %arg3[%c15, %c0_31] : memref<24x4xf32, #tpu.memory_space<vmem>>, vector<1x4xf32>
    tpu.vector_store %arg3[%c15, %c0_31], %95 {strides = array<i32>} : memref<24x4xf32, #tpu.memory_space<vmem>>, vector<1x4xf32>,
    %c16_i32 = arith.constant 16 : i32
    %97 = arith.addi %0, %c16_i32 : i32
    %98 = arith.index_cast %97 : i32 to index
    %99 = memref.load %arg1[%98] : memref<48xi32, #tpu.memory_space<smem>>
    %100 = arith.index_cast %99 : i32 to index
    %c0_32 = arith.constant 0 : index
    %101 = vector.load %arg2[%100, %c0_32] : memref<40x4xf32, #tpu.memory_space<vmem>>, vector<1x4xf32>
    %c16 = arith.constant 16 : index
    %c0_33 = arith.constant 0 : index
    %102 = vector.load %arg3[%c16, %c0_33] : memref<24x4xf32, #tpu.memory_space<vmem>>, vector<1x4xf32>
    tpu.vector_store %arg3[%c16, %c0_33], %101 {strides = array<i32>} : memref<24x4xf32, #tpu.memory_space<vmem>>, vector<1x4xf32>,
    %c17_i32 = arith.constant 17 : i32
    %103 = arith.addi %0, %c17_i32 : i32
    %104 = arith.index_cast %103 : i32 to index
    %105 = memref.load %arg1[%104] : memref<48xi32, #tpu.memory_space<smem>>
    %106 = arith.index_cast %105 : i32 to index
    %c0_34 = arith.constant 0 : index
    %107 = vector.load %arg2[%106, %c0_34] : memref<40x4xf32, #tpu.memory_space<vmem>>, vector<1x4xf32>
    %c17 = arith.constant 17 : index
    %c0_35 = arith.constant 0 : index
    %108 = vector.load %arg3[%c17, %c0_35] : memref<24x4xf32, #tpu.memory_space<vmem>>, vector<1x4xf32>
    tpu.vector_store %arg3[%c17, %c0_35], %107 {strides = array<i32>} : memref<24x4xf32, #tpu.memory_space<vmem>>, vector<1x4xf32>,
    %c18_i32 = arith.constant 18 : i32
    %109 = arith.addi %0, %c18_i32 : i32
    %110 = arith.index_cast %109 : i32 to index
    %111 = memref.load %arg1[%110] : memref<48xi32, #tpu.memory_space<smem>>
    %112 = arith.index_cast %111 : i32 to index
    %c0_36 = arith.constant 0 : index
    %113 = vector.load %arg2[%112, %c0_36] : memref<40x4xf32, #tpu.memory_space<vmem>>, vector<1x4xf32>
    %c18 = arith.constant 18 : index
    %c0_37 = arith.constant 0 : index
    %114 = vector.load %arg3[%c18, %c0_37] : memref<24x4xf32, #tpu.memory_space<vmem>>, vector<1x4xf32>
    tpu.vector_store %arg3[%c18, %c0_37], %113 {strides = array<i32>} : memref<24x4xf32, #tpu.memory_space<vmem>>, vector<1x4xf32>,
    %c19_i32 = arith.constant 19 : i32
    %115 = arith.addi %0, %c19_i32 : i32
    %116 = arith.index_cast %115 : i32 to index
    %117 = memref.load %arg1[%116] : memref<48xi32, #tpu.memory_space<smem>>
    %118 = arith.index_cast %117 : i32 to index
    %c0_38 = arith.constant 0 : index
    %119 = vector.load %arg2[%118, %c0_38] : memref<40x4xf32, #tpu.memory_space<vmem>>, vector<1x4xf32>
    %c19 = arith.constant 19 : index
    %c0_39 = arith.constant 0 : index
    %120 = vector.load %arg3[%c19, %c0_39] : memref<24x4xf32, #tpu.memory_space<vmem>>, vector<1x4xf32>
    tpu.vector_store %arg3[%c19, %c0_39], %119 {strides = array<i32>} : memref<24x4xf32, #tpu.memory_space<vmem>>, vector<1x4xf32>,
    %c20_i32 = arith.constant 20 : i32
    %121 = arith.addi %0, %c20_i32 : i32
    %122 = arith.index_cast %121 : i32 to index
    %123 = memref.load %arg1[%122] : memref<48xi32, #tpu.memory_space<smem>>
    %124 = arith.index_cast %123 : i32 to index
    %c0_40 = arith.constant 0 : index
    %125 = vector.load %arg2[%124, %c0_40] : memref<40x4xf32, #tpu.memory_space<vmem>>, vector<1x4xf32>
    %c20 = arith.constant 20 : index
    %c0_41 = arith.constant 0 : index
    %126 = vector.load %arg3[%c20, %c0_41] : memref<24x4xf32, #tpu.memory_space<vmem>>, vector<1x4xf32>
    tpu.vector_store %arg3[%c20, %c0_41], %125 {strides = array<i32>} : memref<24x4xf32, #tpu.memory_space<vmem>>, vector<1x4xf32>,
    %c21_i32 = arith.constant 21 : i32
    %127 = arith.addi %0, %c21_i32 : i32
    %128 = arith.index_cast %127 : i32 to index
    %129 = memref.load %arg1[%128] : memref<48xi32, #tpu.memory_space<smem>>
    %130 = arith.index_cast %129 : i32 to index
    %c0_42 = arith.constant 0 : index
    %131 = vector.load %arg2[%130, %c0_42] : memref<40x4xf32, #tpu.memory_space<vmem>>, vector<1x4xf32>
    %c21 = arith.constant 21 : index
    %c0_43 = arith.constant 0 : index
    %132 = vector.load %arg3[%c21, %c0_43] : memref<24x4xf32, #tpu.memory_space<vmem>>, vector<1x4xf32>
    tpu.vector_store %arg3[%c21, %c0_43], %131 {strides = array<i32>} : memref<24x4xf32, #tpu.memory_space<vmem>>, vector<1x4xf32>,
    %c22_i32 = arith.constant 22 : i32
    %133 = arith.addi %0, %c22_i32 : i32
    %134 = arith.index_cast %133 : i32 to index
    %135 = memref.load %arg1[%134] : memref<48xi32, #tpu.memory_space<smem>>
    %136 = arith.index_cast %135 : i32 to index
    %c0_44 = arith.constant 0 : index
    %137 = vector.load %arg2[%136, %c0_44] : memref<40x4xf32, #tpu.memory_space<vmem>>, vector<1x4xf32>
    %c22 = arith.constant 22 : index
    %c0_45 = arith.constant 0 : index
    %138 = vector.load %arg3[%c22, %c0_45] : memref<24x4xf32, #tpu.memory_space<vmem>>, vector<1x4xf32>
    tpu.vector_store %arg3[%c22, %c0_45], %137 {strides = array<i32>} : memref<24x4xf32, #tpu.memory_space<vmem>>, vector<1x4xf32>,
    %c23_i32 = arith.constant 23 : i32
    %139 = arith.addi %0, %c23_i32 : i32
    %140 = arith.index_cast %139 : i32 to index
    %141 = memref.load %arg1[%140] : memref<48xi32, #tpu.memory_space<smem>>
    %142 = arith.index_cast %141 : i32 to index
    %c0_46 = arith.constant 0 : index
    %143 = vector.load %arg2[%142, %c0_46] : memref<40x4xf32, #tpu.memory_space<vmem>>, vector<1x4xf32>
    %c23 = arith.constant 23 : index
    %c0_47 = arith.constant 0 : index
    %144 = vector.load %arg3[%c23, %c0_47] : memref<24x4xf32, #tpu.memory_space<vmem>>, vector<1x4xf32>
    tpu.vector_store %arg3[%c23, %c0_47], %143 {strides = array<i32>} : memref<24x4xf32, #tpu.memory_space<vmem>>, vector<1x4xf32>,
    return
  }
  func.func @transform_0(%arg0: i32, %arg1: memref<48xi32, #tpu.memory_space<smem>>) -> (i32, i32) {
    %c0_i32 = arith.constant 0 : i32
    %c0_i32_0 = arith.constant 0 : i32
    %c0_i32_1 = arith.constant 0 : i32
    return %c0_i32, %c0_i32_0 : i32, i32
  }
  func.func @transform_1(%arg0: i32, %arg1: memref<48xi32, #tpu.memory_space<smem>>) -> (i32, i32) {
    %c0_i32 = arith.constant 0 : i32
    %c0_i32_0 = arith.constant 0 : i32
    return %arg0, %c0_i32 : i32, i32
  }
}

</mosaic_0001>

<bundles_post_ra>
// kernel: tpu_custom_call.1
= control target key start
LH: loop header
LB: loop body
LE: loop exit
PB: predicated region body
PF: predicated region fallthrough
CT: control target
= control target key end

     0   :  { %s513_s0 = inlined_call_operand.vmem [shape: s32[48], index: 0, kind: input, shape index: {}]   ;;  %s514_s1 = inlined_call_operand.vmem [shape: f32[40,4], index: 1, kind: input, shape index: {}]   ;;  %s515_s2 = inlined_call_operand.vmem [shape: f32[48,4], index: 2, kind: output, shape index: {}]  }
   0x1   :  { %s7_s11 = sshll.u32 %s513_s0, 4  ;;  %s8_s11 = int_to_ptr.vmem [resolvable:$true] %s7_s11 }
   0x2   :  { %s310_s12 = scalar_lea.vmem %s8_s11, 16  ;;  %p315_p1 = scmp.lt.s32.totalorder %s8_s11, %s8_s11 }
   0x3   :  { %p311_p0 = scmp.ne.s32.totalorder %s8_s11, %s310_s12  ;;  %p316_p2 = scmp.lt.s32.totalorder %s310_s12, %s310_s12 }
   0x5   :  { %p317_p3 = por %p316_p2, %p315_p1 }
   0x7   :  { %p318_p4 = pnand %p317_p3, %p311_p0 }
   0x9   :  { %321 = shalt.err (!%p318_p4)  }
   0xa   :  { %s332_s13 = smov [#allocation3]  }
   0xb   :  { %10 = dma.vmem_to_smem %s8_s11, 16, %s332_s13, [#allocation2] }
   0xc   :  { %326 = dma.done.wait [#allocation2], 16 }
   0xd   :  { %327 = vsyncadd [#allocation2], 4294967280 }
   0xe   :  { %12 = sfence }
   0xf   :  { %s351_s14 = smov 0  }
  0x10 LB: > { %s294_s0 = sadd.s32 4294967295, %s330_s14   ;;  %p297_p5 = scmp.ge.s32.totalorder %s330_s14, 1  ;;  %s330_s14 = sphi %s351_s14, %s18_s14  }
  0x11   : > { %p84_p6 = scmp.lt.s32.totalorder %s330_s14, 3 }
  0x13   : > { %p85_p7 = pnand %p297_p5, %p84_p6 }
  0x14   : > { %s99_s15 = smul.u32 (!%p85_p7), 3, %s294_s0 }
  0x15   : > { %88 = sbr.rel (%p85_p7) target bundleno = 67 (0x43), region = 24 }
  0x16   : > { %s359_s16 = smul.u32 (!%p85_p7), 24, %s294_s0  ;;  %p100_p8 = scmp.lt.s32.totalorder (!%p85_p7), %s99_s15, 5 }
  0x18   : > { %s106_s17 = sld [smem:[#allocation3 + %s359_s16]] (!%p85_p7)  ;;  %s111_s18 = sadd.s32 (!%p85_p7), 1, %s359_s16 }
  0x19   : > { %s112_s19 = sld [smem:[#allocation3 + %s111_s18]] (!%p85_p7)  ;;  %s116_s20 = sadd.s32 (!%p85_p7), 2, %s359_s16 }
  0x1a   : > { %s517_s15 = smov (!%p100_p8, %s99_s15), 5  ;;  %s117_s22 = sld [smem:[#allocation3 + %s116_s20]]  ;;  %vm109_vm0 = vcmask 24576  }
  0x1b   : > { %s298_s21 = sshll.u32 %s517_s15, 3  ;;  %s121_s26 = sadd.s32 3, %s359_s16 }
  0x1c   : > { %s367_s25 = scalar_lea.vmem %s515_s2, %s298_s21  ;;  %s122_s27 = sld [smem:[#allocation3 + %s121_s26]] }
  0x1d   : > { %s126_s28 = sadd.s32 4, %s359_s16  ;;  %s131_s5 = sadd.s32 5, %s359_s16 }
  0x1e   : > { %s107_s3 = scalar_lea.vmem %s514_s1, %s106_s17  ;;  %s127_s4 = sld [smem:[#allocation3 + %s126_s28]] }
  0x1f   : > { %v108_v0 = vld [vmem:[%s107_s3] sm:$0x1]  ;;  %s136_s6 = sadd.s32 6, %s359_s16  ;;  %s113_s9 = scalar_lea.vmem %s514_s1, %s112_s19 }
  0x20   : > { %110 = vst.msk [vmem:[%s367_s25] sm:$0x1] %vm109_vm0, %v108_v0  ;;  %s132_s10 = sld [smem:[#allocation3 + %s131_s5]]  ;;  %v114_v1 = vld [vmem:[%s113_s9] sm:$0x1]  ;;  %s118_s13 = scalar_lea.vmem %s514_s1, %s117_s22 }
  0x21   : > { %s137_s0 = sld [smem:[#allocation3 + %s136_s6]]  ;;  %115 = vst.msk [vmem:[%s367_s25 + $0x1] sm:$0x1] %vm109_vm0, %v114_v1  ;;  %v119_v2 = vld [vmem:[%s118_s13] sm:$0x1]  ;;  %s141_s15 = sadd.s32 7, %s359_s16 }
  0x22   : > { %s146_s17 = sadd.s32 8, %s359_s16  ;;  %120 = vst.msk [vmem:[%s367_s25 + $0x2] sm:$0x1] %vm109_vm0, %v119_v2  ;;  %s123_s19 = scalar_lea.vmem %s514_s1, %s122_s27 }
  0x23   : > { %s142_s21 = sld [smem:[#allocation3 + %s141_s15]]  ;;  %v124_v3 = vld [vmem:[%s123_s19] sm:$0x1]  ;;  %s151_s28 = sadd.s32 9, %s359_s16 }
  0x24   : > { %s128_s22 = scalar_lea.vmem %s514_s1, %s127_s4  ;;  %s147_s26 = sld [smem:[#allocation3 + %s146_s17]]  ;;  %125 = vst.msk [vmem:[%s367_s25 + $0x3] sm:$0x1] %vm109_vm0, %v124_v3 }
  0x25   : > { %v129_v4 = vld [vmem:[%s128_s22] sm:$0x1]  ;;  %s156_s29 = sadd.s32 10, %s359_s16  ;;  %s152_s5 = sld [smem:[#allocation3 + %s151_s28]] }
  0x26   : > { %130 = vst.msk [vmem:[%s367_s25 + $0x4] sm:$0x1] %vm109_vm0, %v129_v4  ;;  %s133_s27 = scalar_lea.vmem %s514_s1, %s132_s10  ;;  %s157_s8 = sld [smem:[#allocation3 + %s156_s29]] }
  0x27   : > { %v134_v5 = vld [vmem:[%s133_s27] sm:$0x1]  ;;  %s138_s4 = scalar_lea.vmem %s514_s1, %s137_s0  ;;  %s161_s9 = sadd.s32 11, %s359_s16 }
  0x28   : > { %135 = vst.msk [vmem:[%s367_s25 + $0x5] sm:$0x1] %vm109_vm0, %v134_v5  ;;  %v139_v6 = vld [vmem:[%s138_s4] sm:$0x1]  ;;  %s166_s11 = sadd.s32 12, %s359_s16  ;;  %s162_s15 = sld [smem:[#allocation3 + %s161_s9]] }
  0x29   : > { %140 = vst.msk [vmem:[%s367_s25 + $0x6] sm:$0x1] %vm109_vm0, %v139_v6  ;;  %s143_s10 = scalar_lea.vmem %s514_s1, %s142_s21  ;;  %s167_s20 = sld [smem:[#allocation3 + %s166_s11]] }
  0x2a   : > { %v144_v7 = vld [vmem:[%s143_s10] sm:$0x1]  ;;  %s148_s0 = scalar_lea.vmem %s514_s1, %s147_s26  ;;  %s171_s19 = sadd.s32 13, %s359_s16 }
  0x2b   : > { %145 = vst.msk [vmem:[%s367_s25 + $0x7] sm:$0x1] %vm109_vm0, %v144_v7  ;;  %v149_v8 = vld [vmem:[%s148_s0] sm:$0x1]  ;;  %s176_s23 = sadd.s32 14, %s359_s16  ;;  %s153_s21 = scalar_lea.vmem %s514_s1, %s152_s5 }
  0x2c   : > { %150 = vst.msk [vmem:[%s367_s25 + $0x8] sm:$0x1] %vm109_vm0, %v149_v8  ;;  %s172_s28 = sld [smem:[#allocation3 + %s171_s19]]  ;;  %v154_v9 = vld [vmem:[%s153_s21] sm:$0x1]  ;;  %s158_s26 = scalar_lea.vmem %s514_s1, %s157_s8 }
  0x2d   : > { %s177_s3 = sld [smem:[#allocation3 + %s176_s23]]  ;;  %155 = vst.msk [vmem:[%s367_s25 + $0x9] sm:$0x1] %vm109_vm0, %v154_v9  ;;  %v159_v10 = vld [vmem:[%s158_s26] sm:$0x1]  ;;  %s181_s27 = sadd.s32 15, %s359_s16 }
  0x2e   : > { %s186_s6 = sadd.s32 16, %s359_s16  ;;  %160 = vst.msk [vmem:[%s367_s25 + $0xa] sm:$0x1] %vm109_vm0, %v159_v10  ;;  %s163_s5 = scalar_lea.vmem %s514_s1, %s162_s15 }
  0x2f   : > { %s182_s9 = sld [smem:[#allocation3 + %s181_s27]]  ;;  %v164_v11 = vld [vmem:[%s163_s5] sm:$0x1]  ;;  %s168_s8 = scalar_lea.vmem %s514_s1, %s167_s20 }
  0x30   : > { %s187_s13 = sld [smem:[#allocation3 + %s186_s6]]  ;;  %165 = vst.msk [vmem:[%s367_s25 + $0xb] sm:$0x1] %vm109_vm0, %v164_v11  ;;  %v169_v12 = vld [vmem:[%s168_s8] sm:$0x1]  ;;  %s191_s10 = sadd.s32 17, %s359_s16 }
  0x31   : > { %s196_s17 = sadd.s32 18, %s359_s16  ;;  %170 = vst.msk [vmem:[%s367_s25 + $0xc] sm:$0x1] %vm109_vm0, %v169_v12  ;;  %s192_s19 = sld [smem:[#allocation3 + %s191_s10]] }
  0x32   : > { %s173_s15 = scalar_lea.vmem %s514_s1, %s172_s28  ;;  %s197_s22 = sld [smem:[#allocation3 + %s196_s17]] }
  0x33   : > { %v174_v13 = vld [vmem:[%s173_s15] sm:$0x1]  ;;  %s178_s20 = scalar_lea.vmem %s514_s1, %s177_s3  ;;  %s201_s21 = sadd.s32 19, %s359_s16 }
  0x34   : > { %175 = vst.msk [vmem:[%s367_s25 + $0xd] sm:$0x1] %vm109_vm0, %v174_v13  ;;  %v179_v14 = vld [vmem:[%s178_s20] sm:$0x1]  ;;  %s206_s29 = sadd.s32 20, %s359_s16  ;;  %s202_s27 = sld [smem:[#allocation3 + %s201_s21]] }
  0x35   : > { %180 = vst.msk [vmem:[%s367_s25 + $0xe] sm:$0x1] %vm109_vm0, %v179_v14  ;;  %s183_s28 = scalar_lea.vmem %s514_s1, %s182_s9  ;;  %s207_s4 = sld [smem:[#allocation3 + %s206_s29]] }
  0x36   : > { %v184_v15 = vld [vmem:[%s183_s28] sm:$0x1]  ;;  %s188_s3 = scalar_lea.vmem %s514_s1, %s187_s13  ;;  %s211_s5 = sadd.s32 21, %s359_s16 }
  0x37   : > { %185 = vst.msk [vmem:[%s367_s25 + $0xf] sm:$0x1] %vm109_vm0, %v184_v15  ;;  %v189_v16 = vld [vmem:[%s188_s3] sm:$0x1]  ;;  %s216_s11 = sadd.s32 22, %s359_s16  ;;  %s193_s9 = scalar_lea.vmem %s514_s1, %s192_s19 }
  0x38   : > { %190 = vst.msk [vmem:[%s367_s25 + $0x10] sm:$0x1] %vm109_vm0, %v189_v16  ;;  %s212_s10 = sld [smem:[#allocation3 + %s211_s5]]  ;;  %v194_v17 = vld [vmem:[%s193_s9] sm:$0x1]  ;;  %s198_s13 = scalar_lea.vmem %s514_s1, %s197_s22 }
  0x39   : > { %s217_s0 = sld [smem:[#allocation3 + %s216_s11]]  ;;  %195 = vst.msk [vmem:[%s367_s25 + $0x11] sm:$0x1] %vm109_vm0, %v194_v17  ;;  %v199_v18 = vld [vmem:[%s198_s13] sm:$0x1]  ;;  %s221_s15 = sadd.s32 23, %s359_s16 }
  0x3a   : > { %200 = vst.msk [vmem:[%s367_s25 + $0x12] sm:$0x1] %vm109_vm0, %v199_v18  ;;  %s203_s19 = scalar_lea.vmem %s514_s1, %s202_s27  ;;  %s222_s20 = sld [smem:[#allocation3 + %s221_s15]] }
  0x3b   : > { %v204_v19 = vld [vmem:[%s203_s19] sm:$0x1]  ;;  %s208_s22 = scalar_lea.vmem %s514_s1, %s207_s4 }
  0x3c   : > { %205 = vst.msk [vmem:[%s367_s25 + $0x13] sm:$0x1] %vm109_vm0, %v204_v19  ;;  %v209_v20 = vld [vmem:[%s208_s22] sm:$0x1] }
  0x3d   : > { %210 = vst.msk [vmem:[%s367_s25 + $0x14] sm:$0x1] %vm109_vm0, %v209_v20 }
  0x3e   : > { %s213_s26 = scalar_lea.vmem %s514_s1, %s212_s10 }
  0x3f   : > { %v214_v21 = vld [vmem:[%s213_s26] sm:$0x1]  ;;  %s218_s27 = scalar_lea.vmem %s514_s1, %s217_s0 }
  0x40   : > { %215 = vst.msk [vmem:[%s367_s25 + $0x15] sm:$0x1] %vm109_vm0, %v214_v21  ;;  %v219_v22 = vld [vmem:[%s218_s27] sm:$0x1]  ;;  %s223_s4 = scalar_lea.vmem %s514_s1, %s222_s20 }
  0x41   : > { %220 = vst.msk [vmem:[%s367_s25 + $0x16] sm:$0x1] %vm109_vm0, %v219_v22  ;;  %v224_v23 = vld [vmem:[%s223_s4] sm:$0x1] }
  0x42   : > { %225 = vst.msk [vmem:[%s367_s25 + $0x17] sm:$0x1] %vm109_vm0, %v224_v23 }
  0x43 PF: > { %s18_s14 = sadd.s32 1, %s330_s14  }
  0x44   : > { %p15_p9 = scmp.ge.s32.totalorder %s18_s14, 4  }
  0x46   :  { %17 = sbr.rel (!%p15_p9) target bundleno = 16 (0x10), region = 75 }

</bundles_post_ra>
